<compile_context>
chip_gen: v5e
topology: v5e:2x2
jax: 0.10.0
libtpu: 0.0.40
codegen_flags: <defaults>
</compile_context>

<pallas_src>
import functools

import jax
import jax.numpy as jnp
from jax.experimental import pallas as pl
from jax.experimental.pallas import tpu as pltpu


def gated_attention_kernel(h_ref, wvu_ref, bvu_ref, ww_ref, bw_ref,
                           z_ref, a_ref, *, bags, N, M, L, K):
    rows = bags * N
    H = h_ref[...]                                              # (bags*N, M) bf16

    # Fused attention_V / attention_U projection: one MXU pass over the group.
    vu = jnp.dot(H, wvu_ref[...],
                 preferred_element_type=jnp.float32) + bvu_ref[...]     # (rows, 2L) f32
    gated = jnp.tanh(vu[:, :L]) * jax.nn.sigmoid(vu[:, L:])             # (rows, L)  f32

    # attention_w: Linear(L -> K); bf16 operands, f32 accumulate.
    logits = jnp.dot(gated.astype(jnp.bfloat16), ww_ref[...],
                     preferred_element_type=jnp.float32) + bw_ref[...]  # (rows, K)

    # Per-bag softmax over the N instances (reduce over axis 1 of the
    # (bags, N, K) view -- NOT over the fused rows axis).
    lg = logits.reshape(bags, N, K)
    m = jnp.max(lg, axis=1, keepdims=True)                      # (bags, 1, K)
    e = jnp.exp(lg - m)                                         # (bags, N, K)
    attn = e / jnp.sum(e, axis=1, keepdims=True)                # exact normalization

    # A slab: lane-dense (K, bags*N) with slab[k, b*N + n] = attn[b, n, k].
    a_ref[...] = attn.reshape(rows, K).T

    # Z = A @ H per bag, written as (bags*K, M) rows (b-major, k-minor).
    if K == 1:
        # VPU broadcast-multiply + per-bag reduction (no 1-row MXU matmuls).
        Hf = H.astype(jnp.float32).reshape(bags, N, M)
        z_ref[...] = jnp.sum(attn * Hf, axis=1)                 # (bags, M) f32
    else:
        z = jax.lax.dot_general(                                # (bags, K, M)
            attn.astype(jnp.bfloat16), H.reshape(bags, N, M),
            (((1,), (1,)), ((0,), (0,))),
            preferred_element_type=jnp.float32)
        z_ref[...] = z.reshape(bags * K, M)


def gated_attention_batched(x, params, block_bags=None):
    """x: (B, N, M) float32.  Returns Z: (B, K, M), A: (B, K, N)."""
    wv, bv, wu, bu, ww, bw = (params["wv"], params["bv"], params["wu"],
                              params["bu"], params["ww"], params["bw"])
    B, N, M = x.shape
    L = wv.shape[1]
    K = ww.shape[1]

    # Fuse V/U weights + biases once on the host side; MXU operands in bf16.
    w_vu = jnp.concatenate([wv, wu], axis=1).astype(jnp.bfloat16)       # (M, 2L)
    b_vu = jnp.concatenate([bv, bu]).reshape(1, 2 * L).astype(jnp.float32)
    ww_b = ww.astype(jnp.bfloat16)                                      # (L, K)
    bw2 = bw.reshape(1, K).astype(jnp.float32)

    # Group ~128 fused rows per grid step; pad the bag axis so it tiles evenly.
    if block_bags is None:
        block_bags = max(1, min(16, 128 // max(N, 1)))
    bt = int(min(block_bags, B))
    # Keep all tiled block dims legal when actually tiling; otherwise fall back
    # to a single block covering the whole (padded) batch (always legal).
    if bt < B and ((bt * N) % 128 != 0 or (bt * K) % 8 != 0):
        bt = B
    G = pl.cdiv(B, bt)
    B_pad = G * bt

    xh = x.astype(jnp.bfloat16)
    if B_pad != B:
        xh = jnp.concatenate(
            [xh, jnp.zeros((B_pad - B, N, M), jnp.bfloat16)], axis=0)
    x_rows = xh.reshape(B_pad * N, M)                                   # fused rows

    kernel = functools.partial(gated_attention_kernel,
                               bags=bt, N=N, M=M, L=L, K=K)

    flops = B_pad * (2 * N * M * (2 * L) + 2 * N * L * K + 2 * K * N * M)
    transcendentals = B_pad * (2 * N * L + N * K)
    bytes_accessed = (2 * B_pad * N * M                 # H (bf16)
                      + 2 * (M * 2 * L + L * K)         # weights (bf16, resident)
                      + 4 * (2 * L + K)                 # biases
                      + 4 * B_pad * K * (M + N))        # Z, A outputs

    z2d, a_slab = pl.pallas_call(
        kernel,
        out_shape=(
            jax.ShapeDtypeStruct((B_pad * K, M), jnp.float32),   # Z rows
            jax.ShapeDtypeStruct((K, B_pad * N), jnp.float32),   # lane-dense A slab
        ),
        grid=(G,),
        in_specs=[
            pl.BlockSpec((bt * N, M), lambda g: (g, 0)),     # one group of bags / step
            pl.BlockSpec((M, 2 * L), lambda g: (0, 0)),      # fused weights: resident
            pl.BlockSpec((1, 2 * L), lambda g: (0, 0)),
            pl.BlockSpec((L, K), lambda g: (0, 0)),
            pl.BlockSpec((1, K), lambda g: (0, 0)),
        ],
        out_specs=(
            pl.BlockSpec((bt * K, M), lambda g: (g, 0)),
            pl.BlockSpec((K, bt * N), lambda g: (0, g)),
        ),
        compiler_params=pltpu.CompilerParams(
            dimension_semantics=("parallel",)),
        cost_estimate=pl.CostEstimate(
            flops=flops, transcendentals=transcendentals,
            bytes_accessed=bytes_accessed),
    )(x_rows, w_vu, b_vu, ww_b, bw2)

    # Un-pack outputs (pure layout plumbing outside the kernel).
    Z = z2d.reshape(B_pad, K, M)[:B]
    A = a_slab.reshape(K, B_pad, N).transpose(1, 0, 2)[:B]
    return Z, A


def gated_attention(x, params):
    """x: (1, N, M) -- the PyTorch forward layout.  Returns (Z, A) = ((K, M), (K, N))."""
    z, a = gated_attention_batched(x, params)
    return z[0], a[0]


def init_params(key, M, L, K):
    ks = jax.random.split(key, 6)
    scale_m = 1.0 / jnp.sqrt(M)
    scale_l = 1.0 / jnp.sqrt(L)
    return dict(
        wv=jax.random.uniform(ks[0], (M, L), jnp.float32, -scale_m, scale_m),
        bv=jax.random.uniform(ks[1], (L,), jnp.float32, -scale_m, scale_m),
        wu=jax.random.uniform(ks[2], (M, L), jnp.float32, -scale_m, scale_m),
        bu=jax.random.uniform(ks[3], (L,), jnp.float32, -scale_m, scale_m),
        ww=jax.random.uniform(ks[4], (L, K), jnp.float32, -scale_l, scale_l),
        bw=jax.random.uniform(ks[5], (K,), jnp.float32, -scale_l, scale_l),
    )


def reference_batched(x, p):
    """Pure-JAX f32 reference of the PyTorch forward, batched over bags."""
    av = jnp.tanh(jnp.einsum("bnm,ml->bnl", x, p["wv"]) + p["bv"])
    au = jax.nn.sigmoid(jnp.einsum("bnm,ml->bnl", x, p["wu"]) + p["bu"])
    logits = jnp.einsum("bnl,lk->bnk", av * au, p["ww"]) + p["bw"]   # (B, N, K)
    A = jax.nn.softmax(jnp.swapaxes(logits, 1, 2), axis=2)           # (B, K, N)
    Z = jnp.einsum("bkn,bnm->bkm", A, x)                             # (B, K, M)
    return Z, A


if __name__ == "__main__":
    # net_params: in_features M=32, decom_space L=16, ATTENTION_BRANCHES K=1.
    N, M, L, K = 8, 32, 16, 1
    key = jax.random.PRNGKey(0)
    kx, kb, kc, kp = jax.random.split(key, 4)
    params = init_params(kp, M, L, K)

    # bf16 MXU operands -> compare against the f32 reference at a matching tol.
    TOL = dict(atol=2e-2, rtol=2e-2)

    # 1) Single bag: exactly the PyTorch forward semantics (x is (1, N, M)).
    x1 = jax.random.normal(kx, (1, N, M), jnp.float32)
    Z, A = gated_attention(x1, params)
    jax.block_until_ready((Z, A))
    Z_ref, A_ref = reference_batched(x1, params)
    assert Z.shape == (K, M) and A.shape == (K, N)
    assert jnp.allclose(Z, Z_ref[0], **TOL), "Z mismatch (single bag)"
    assert jnp.allclose(A, A_ref[0], **TOL), "A mismatch (single bag)"
    assert jnp.allclose(jnp.sum(A, axis=1), 1.0, atol=1e-5), "A not normalized"

    # 2) Batched bags: grid of 2 groups (16 bags x 8 instances = 128 rows/step),
    #    so the "parallel" bag axis can shard across v7x's two TensorCores.
    B = 32
    xb = jax.random.normal(kb, (B, N, M), jnp.float32)
    Zb, Ab = gated_attention_batched(xb, params)
    jax.block_until_ready((Zb, Ab))
    Zb_ref, Ab_ref = reference_batched(xb, params)
    assert Zb.shape == (B, K, M) and Ab.shape == (B, K, N)
    assert jnp.allclose(Zb, Zb_ref, **TOL), "Z mismatch (batched)"
    assert jnp.allclose(Ab, Ab_ref, **TOL), "A mismatch (batched)"

    # 3) Batch size that does not divide the bag group (exercises padding).
    B2 = 20
    xc = jax.random.normal(kc, (B2, N, M), jnp.float32)
    Zc, Ac = gated_attention_batched(xc, params)
    jax.block_until_ready((Zc, Ac))
    Zc_ref, Ac_ref = reference_batched(xc, params)
    assert jnp.allclose(Zc, Zc_ref, **TOL), "Z mismatch (padded batch)"
    assert jnp.allclose(Ac, Ac_ref, **TOL), "A mismatch (padded batch)"

    print("KERNEL_OK")
</pallas_src>

<mosaic_0001>
module attributes {stable_mosaic.version = 11 : i64} {
  func.func @gated_attention_kernel(%arg0: i32, %arg1: memref<8x32xbf16, #tpu.memory_space<vmem>>, %arg2: memref<32x32xbf16, #tpu.memory_space<vmem>>, %arg3: memref<1x32xf32, #tpu.memory_space<vmem>>, %arg4: memref<16x1xbf16, #tpu.memory_space<vmem>>, %arg5: memref<1x1xf32, #tpu.memory_space<vmem>>, %arg6: memref<1x32xf32, #tpu.memory_space<vmem>>, %arg7: memref<1x8xf32, #tpu.memory_space<vmem>>) attributes {dimension_semantics = [#tpu.dimension_semantics<parallel>], iteration_bounds = array<i64: 1>, scalar_prefetch = 0 : i64, scratch_operands = 0 : i64, tpu.core_type = #tpu.core_type<tc>, window_params = [{transform_indices = @transform_0, window_bounds = array<i64: 8, 32>}, {pipeline_mode = #tpu.pipeline_mode<synchronous>, transform_indices = @transform_1, window_bounds = array<i64: 32, 32>}, {pipeline_mode = #tpu.pipeline_mode<synchronous>, transform_indices = @transform_2, window_bounds = array<i64: 1, 32>}, {pipeline_mode = #tpu.pipeline_mode<synchronous>, transform_indices = @transform_3, window_bounds = array<i64: 16, 1>}, {pipeline_mode = #tpu.pipeline_mode<synchronous>, transform_indices = @transform_4, window_bounds = array<i64: 1, 1>}, {transform_indices = @transform_5, window_bounds = array<i64: 1, 32>}, {transform_indices = @transform_6, window_bounds = array<i64: 1, 8>}]} {
    %c0 = arith.constant 0 : index
    %c0_0 = arith.constant 0 : index
    %0 = vector.load %arg1[%c0, %c0_0] : memref<8x32xbf16, #tpu.memory_space<vmem>>, vector<8x32xbf16>
    %c0_1 = arith.constant 0 : index
    %c0_2 = arith.constant 0 : index
    %1 = vector.load %arg2[%c0_1, %c0_2] : memref<32x32xbf16, #tpu.memory_space<vmem>>, vector<32x32xbf16>
    %cst = arith.constant dense<0.000000e+00> : vector<8x32xf32>
    %2 = tpu.matmul %0, %1, %cst {dimension_numbers = #tpu.dot_dimension_numbers<[1], [0], [0], [1], [0, 0, 1, 1], [], []>} : vector<8x32xbf16>, vector<32x32xbf16>, vector<8x32xf32> -> vector<8x32xf32>
    %c0_3 = arith.constant 0 : index
    %c0_4 = arith.constant 0 : index
    %3 = vector.load %arg3[%c0_3, %c0_4] : memref<1x32xf32, #tpu.memory_space<vmem>>, vector<1x32xf32>
    %4 = vector.broadcast %3 : vector<1x32xf32> to vector<8x32xf32>
    %5 = arith.addf %2, %4 : vector<8x32xf32>
    %6 = vector.extract_strided_slice %5 {offsets = [0, 0], sizes = [8, 16], strides = [1, 1]} : vector<8x32xf32> to vector<8x16xf32>
    %7 = math.tanh %6 : vector<8x16xf32>
    %8 = vector.extract_strided_slice %5 {offsets = [0, 16], sizes = [8, 16], strides = [1, 1]} : vector<8x32xf32> to vector<8x16xf32>
    %9 = arith.negf %8 : vector<8x16xf32>
    %10 = math.exp %9 : vector<8x16xf32>
    %cst_5 = arith.constant 1.000000e+00 : f32
    %11 = vector.broadcast %cst_5 : f32 to vector<8x16xf32>
    %12 = arith.addf %11, %10 : vector<8x16xf32>
    %13 = arith.divf %11, %12 : vector<8x16xf32>
    %14 = arith.mulf %7, %13 : vector<8x16xf32>
    %15 = arith.truncf %14 : vector<8x16xf32> to vector<8x16xbf16>
    %c0_6 = arith.constant 0 : index
    %c0_7 = arith.constant 0 : index
    %16 = vector.load %arg4[%c0_6, %c0_7] : memref<16x1xbf16, #tpu.memory_space<vmem>>, vector<16x1xbf16>
    %cst_8 = arith.constant dense<0.000000e+00> : vector<8x1xf32>
    %17 = tpu.matmul %15, %16, %cst_8 {dimension_numbers = #tpu.dot_dimension_numbers<[1], [0], [0], [1], [0, 0, 1, 1], [], []>} : vector<8x16xbf16>, vector<16x1xbf16>, vector<8x1xf32> -> vector<8x1xf32>
    %c0_9 = arith.constant 0 : index
    %c0_10 = arith.constant 0 : index
    %18 = vector.load %arg5[%c0_9, %c0_10] : memref<1x1xf32, #tpu.memory_space<vmem>>, vector<1x1xf32>
    %19 = vector.broadcast %18 : vector<1x1xf32> to vector<8x1xf32>
    %20 = arith.addf %17, %19 : vector<8x1xf32>
    %21 = vector.shape_cast %20 : vector<8x1xf32> to vector<1x8x1xf32>
    %cst_11 = arith.constant dense<0xFF800000> : vector<1x1xf32>
    %22 = vector.multi_reduction <maximumf>, %21, %cst_11 [1] : vector<1x8x1xf32> to vector<1x1xf32>
    %23 = vector.shape_cast %22 : vector<1x1xf32> to vector<1x1x1xf32>
    %24 = vector.broadcast %23 : vector<1x1x1xf32> to vector<1x8x1xf32>
    %25 = arith.subf %21, %24 : vector<1x8x1xf32>
    %26 = math.exp %25 : vector<1x8x1xf32>
    %cst_12 = arith.constant dense<0.000000e+00> : vector<1x1xf32>
    %27 = vector.multi_reduction <add>, %26, %cst_12 [1] : vector<1x8x1xf32> to vector<1x1xf32>
    %28 = vector.shape_cast %27 : vector<1x1xf32> to vector<1x1x1xf32>
    %29 = vector.broadcast %28 : vector<1x1x1xf32> to vector<1x8x1xf32>
    %30 = arith.divf %26, %29 : vector<1x8x1xf32>
    %31 = vector.shape_cast %30 : vector<1x8x1xf32> to vector<8x1xf32>
    %32 = tpu.transpose %31, [1, 0] : vector<8x1xf32> -> vector<1x8xf32>
    %c0_13 = arith.constant 0 : index
    %c0_14 = arith.constant 0 : index
    %33 = vector.load %arg7[%c0_13, %c0_14] : memref<1x8xf32, #tpu.memory_space<vmem>>, vector<1x8xf32>
    tpu.vector_store %arg7[%c0_13, %c0_14], %32 {strides = array<i32>} : memref<1x8xf32, #tpu.memory_space<vmem>>, vector<1x8xf32>,
    %34 = arith.extf %0 : vector<8x32xbf16> to vector<8x32xf32>
    %35 = vector.shape_cast %34 : vector<8x32xf32> to vector<1x8x32xf32>
    %36 = vector.broadcast %30 : vector<1x8x1xf32> to vector<1x8x32xf32>
    %37 = arith.mulf %36, %35 : vector<1x8x32xf32>
    %cst_15 = arith.constant dense<0.000000e+00> : vector<1x32xf32>
    %38 = vector.multi_reduction <add>, %37, %cst_15 [1] : vector<1x8x32xf32> to vector<1x32xf32>
    %c0_16 = arith.constant 0 : index
    %c0_17 = arith.constant 0 : index
    %39 = vector.load %arg6[%c0_16, %c0_17] : memref<1x32xf32, #tpu.memory_space<vmem>>, vector<1x32xf32>
    tpu.vector_store %arg6[%c0_16, %c0_17], %38 {strides = array<i32>} : memref<1x32xf32, #tpu.memory_space<vmem>>, vector<1x32xf32>,
    return
  }
  func.func @transform_0(%arg0: i32) -> (i32, i32) {
    %c0_i32 = arith.constant 0 : i32
    %c0_i32_0 = arith.constant 0 : i32
    return %arg0, %c0_i32 : i32, i32
  }
  func.func @transform_1(%arg0: i32) -> (i32, i32) {
    %c0_i32 = arith.constant 0 : i32
    %c0_i32_0 = arith.constant 0 : i32
    %c0_i32_1 = arith.constant 0 : i32
    return %c0_i32, %c0_i32_0 : i32, i32
  }
  func.func @transform_2(%arg0: i32) -> (i32, i32) {
    %c0_i32 = arith.constant 0 : i32
    %c0_i32_0 = arith.constant 0 : i32
    %c0_i32_1 = arith.constant 0 : i32
    return %c0_i32, %c0_i32_0 : i32, i32
  }
  func.func @transform_3(%arg0: i32) -> (i32, i32) {
    %c0_i32 = arith.constant 0 : i32
    %c0_i32_0 = arith.constant 0 : i32
    %c0_i32_1 = arith.constant 0 : i32
    return %c0_i32, %c0_i32_0 : i32, i32
  }
  func.func @transform_4(%arg0: i32) -> (i32, i32) {
    %c0_i32 = arith.constant 0 : i32
    %c0_i32_0 = arith.constant 0 : i32
    %c0_i32_1 = arith.constant 0 : i32
    return %c0_i32, %c0_i32_0 : i32, i32
  }
  func.func @transform_5(%arg0: i32) -> (i32, i32) {
    %c0_i32 = arith.constant 0 : i32
    %c0_i32_0 = arith.constant 0 : i32
    return %arg0, %c0_i32 : i32, i32
  }
  func.func @transform_6(%arg0: i32) -> (i32, i32) {
    %c0_i32 = arith.constant 0 : i32
    %c0_i32_0 = arith.constant 0 : i32
    return %c0_i32, %arg0 : i32, i32
  }
}

</mosaic_0001>

<bundles_post_ra>
// kernel: tpu_custom_call.1
= control target key start
LH: loop header
LB: loop body
LE: loop exit
PB: predicated region body
PF: predicated region fallthrough
CT: control target
= control target key end

     0   :  { %s440_s0 = inlined_call_operand.vmem [shape: bf16[8,32], index: 0, kind: input, shape index: {}]   ;;  %s441_s1 = inlined_call_operand.hbm [shape: bf16[32,32], index: 1, kind: input, shape index: {}]   ;;  %s442_s2 = inlined_call_operand.vmem [shape: f32[1,32], index: 2, kind: input, shape index: {}]   ;;  %s443_s3 = inlined_call_operand.vmem [shape: bf16[16,1], index: 3, kind: input, shape index: {}]   ;;  %s444_s4 = inlined_call_operand.<no memory space> [shape: f32[1,1], index: 4, kind: input, shape index: {}]   ;;  %s445_s5 = inlined_call_operand.hbm [shape: f32[1,32], index: 5, kind: output, shape index: {0}]   ;;  %s446_s6 = inlined_call_operand.hbm [shape: f32[1,8], index: 6, kind: output, shape index: {1}]  }
   0x1   :  { %v12_v0 = vstv %s444_s4 }
   0x2   :  { %13 = vst [vmem:[#allocation2] sm:$0x1] %v12_v0 }
   0x3   :  { %14 = vsyncpa [#allocation4], 0 }
   0x4   :  { %15 = vsyncpa [#allocation5], 0 }
   0x5   :  { %16 = vsyncpa [#allocation8], 0  ;;  %s23_s25 = sshll.u32 %s441_s1, 4  ;;  %s369_s26 = smov [#allocation3]   ;;  %s24_s25 = int_to_ptr.hbm [resolvable:$true] %s23_s25 }
   0x6   :  { %s25_s27 = sshll.u32 %s369_s26, 4  ;;  %s370_s28 = smov 64   ;;  %s26_s27 = int_to_ptr.vmem [resolvable:$true] %s25_s27 }
   0x7   :  { %s371_s29 = smov 4  }
   0x8   :  { %31 = dma.hbm_to_vmem [thread:$0]  %s24_s25, 256, %s26_s27, [#allocation4], %s370_s28, %s370_s28, %s371_s29  }
   0x9   :  { %363 = dma.done.wait [#allocation4], 256  }
   0xa   :  { %364 = vsyncadd [#allocation4], 4294967040  ;;  %v268_v1 = vld [vmem:[#allocation3 + $0x8] sm:$0xff]  ;;  %v267_v2 = vld [vmem:[#allocation3] sm:$0xff]  ;;  %vm64_vm0 = vcmask 261120   ;;  %vm119_vm5 = vcmask 130048  }
   0xb   :  { %74 = vmatpush.bf16.msra.mxu0 %v268_v1  ;;  %v420_v3 = vld [vmem:[%s440_s0] sm:$0xf]  ;;  %s372_s0 = smov 112   ;;  %vm136_vm6 = vcmask 7168   ;;  %v373_v34 = vmov 0   ;;  %s226_s12 = sshll.u32 %s445_s5, 4  ;;  %s227_s12 = int_to_ptr.hbm [resolvable:$true] %s226_s12 }
   0xc   :  { %v279_v4 = vld [vmem:[%s442_s2] ss:$0 sm:$0xff]  ;;  %278 = vset.pattern.permute.xlu0 %v373_v34  ;;  %v203_v59 = vunpack.c.l.bf16 %v420_v3  ;;  %vm217_vm11 = vcmask 253952   ;;  %s375_s13 = smov [#allocation7]   ;;  %s237_s17 = sshll.u32 %s446_s6, 4  ;;  %vm201_vm12 = vcmask 57344   ;;  %s238_s17 = int_to_ptr.hbm [resolvable:$true] %s237_s17 }
   0xd   :  { %v269_v21 = vld [vmem:[%s443_s3] sm:$0xff]  ;;  %s374_s3 = smov [#allocation6]   ;;  %s235_s14 = sshll.u32 %s375_s13, 4  ;;  %s236_s14 = int_to_ptr.vmem [resolvable:$true] %s235_s14 }
   0xe   :  { %130 = vmatpush.bf16.msra.mxu1 %v269_v21  ;;  %v280_v26 = vld [vmem:[#allocation2] ss:$0 sm:$0xff]  ;;  %s224_s9 = sshll.u32 %s374_s3, 4  ;;  %s225_s9 = int_to_ptr.vmem [resolvable:$true] %s224_s9 }
   0xf   :  { %75 = vmatpush.bf16.msra.mxu0 %v267_v2 }
  0x12   :  { %260 = vmatmul.msk.bf16.vlgmr.msra.gmra.mxu0 %vm64_vm0, %v420_v3 }
  0x8f   :  { %v77_v5 = vpop.f32.mrf.mxu0 }
  0x90   :  { %v78_v6 = vadd.f32 %v279_v4, %v77_v5 }
  0x92   :  { %v261_v7 = vmul.f32 -1.442695, %v78_v6 }
  0x94   :  { %281 = vpow2.f32 %v261_v7 }
  0x97   :  { %v79_v8 = vpop.f32.mrf.mxu0 }
  0x9a   :  { %v282_v9 = vpop.eup %281 }
  0x9b   :  { %v85_v10 = vadd.f32 1.0, %v282_v9 }
  0x9d   :  { %283 = vrcp.f32 %v85_v10  ;;  %v97_v14 = vand.u32 2147483648, %v85_v10  ;;  %v95_v16 = vand.u32 2147483647, %v85_v10  ;;  %vm91_vm2 = vweird.f32 %v85_v10 }
  0x9e   :  { %285 = vtanh.f32 %v78_v6 }
  0x9f   :  { %v98_v18 = vor.u32 1.1754944e-38, %v97_v14  ;;  %vm96_vm4 = vcmp.eq.f32.partialorder %v95_v16, 8.507059e+37 }
  0xa3   :  { %v284_v11 = vpop.eup %283 }
  0xa4   :  { %v87_v12 = vmul.f32 %v284_v11, %v85_v10  ;;  %vm92_vm1 = vweird.f32 %v284_v11  ;;  %v286_v22 = vpop.eup %285 }
  0xa5   :  { %vm93_vm3 = vmor %vm91_vm2, %vm92_vm1 }
  0xa6   :  { %v88_v13 = vsub.f32 1.0, %v87_v12 }
  0xa8   :  { %v89_v15 = vmul.f32 %v284_v11, %v88_v13 }
  0xaa   :  { %v90_v17 = vadd.f32 %v284_v11, %v89_v15 }
  0xac   :  { %v94_v19 = vsel %vm93_vm3, %v284_v11, %v90_v17 }
  0xad   :  { %v99_v20 = vsel %vm96_vm4, %v98_v18, %v94_v19 }
  0xae   :  { %102 = vrot.lane.b32.xlu0 %v99_v20, %s372_s0 }
 0x120   :  { %v103_v23 = vpop.permute.xlu0 %102 }
 0x121   :  { %v105_v24 = vmul.f32 %v286_v22, %v103_v23 }
 0x123   :  { %v106_v25 = vpack.c.bf16 %v105_v24, %v105_v24 }
 0x125   :  { %266 = vmatmul.msk.bf16.vlgmr.msra.gmra.mxu1 %vm119_vm5, %v106_v25 }
 0x1a2   :  { %v132_v27 = vpop.f32.mrf.mxu1 }
 0x1a3   :  { %v133_v28 = vadd.f32 %v280_v26, %v132_v27 }
 0x1a5   :  { %v137_v29 = vsel %vm136_vm6, %v133_v28, -inf }
 0x1a6   :  { %v138_v30 = vrot.slane %v137_v29, 4 }
 0x1a8   :  { %v139_v31 = vmax.f32 %v137_v29, %v138_v30 }
 0x1aa   :  { %v140_v32 = vrot.slane %v139_v31, 2  ;;  %v134_v33 = vpop.f32.mrf.mxu1 }
 0x1ac   :  { %v141_v35 = vmax.f32 %v139_v31, %v140_v32 }
 0x1ae   :  { %v142_v36 = vrot.slane %v141_v35, 1 }
 0x1b0   :  { %v143_v37 = vmax.f32 %v141_v35, %v142_v36 }
 0x1b2   :  { %v144_v38 = vsub.f32 %v133_v28, %v143_v37 }
 0x1b4   :  { %v145_v39 = vmul.f32 1.442695, %v144_v38 }
 0x1b6   :  { %287 = vpow2.f32 %v145_v39 }
 0x1bc   :  { %v288_v40 = vpop.eup %287 }
 0x1bd   :  { %v147_v41 = vsel %vm136_vm6, %v288_v40, 0.0 }
 0x1be   :  { %v148_v42 = vrot.slane %v147_v41, 4 }
 0x1c0   :  { %v149_v43 = vadd.f32 %v148_v42, %v147_v41 }
 0x1c2   :  { %v150_v44 = vrot.slane %v149_v43, 2 }
 0x1c4   :  { %v151_v45 = vadd.f32 %v150_v44, %v149_v43 }
 0x1c6   :  { %v152_v46 = vrot.slane %v151_v45, 1 }
 0x1c8   :  { %v153_v47 = vadd.f32 %v152_v46, %v151_v45 }
 0x1ca   :  { %289 = vrcp.f32 %v153_v47  ;;  %v165_v51 = vand.u32 2147483648, %v153_v47  ;;  %v163_v53 = vand.u32 2147483647, %v153_v47  ;;  %vm159_vm8 = vweird.f32 %v153_v47 }
 0x1cc   :  { %v166_v55 = vor.u32 1.1754944e-38, %v165_v51  ;;  %vm164_vm10 = vcmp.eq.f32.partialorder %v163_v53, 8.507059e+37 }
 0x1d0   :  { %v290_v48 = vpop.eup %289 }
 0x1d1   :  { %v155_v49 = vmul.f32 %v290_v48, %v153_v47  ;;  %vm160_vm7 = vweird.f32 %v290_v48 }
 0x1d2   :  { %vm161_vm9 = vmor %vm159_vm8, %vm160_vm7 }
 0x1d3   :  { %v156_v50 = vsub.f32 1.0, %v155_v49 }
 0x1d5   :  { %v157_v52 = vmul.f32 %v290_v48, %v156_v50 }
 0x1d7   :  { %v158_v54 = vadd.f32 %v290_v48, %v157_v52 }
 0x1d9   :  { %v162_v56 = vsel %vm161_vm9, %v290_v48, %v158_v54 }
 0x1da   :  { %v167_v57 = vsel %vm164_vm10, %v166_v55, %v162_v56 }
 0x1db   :  { %v168_v58 = vmul.f32 %v288_v40, %v167_v57 }
 0x1dd   :  { %169 = vxpose.xlu1.b32.start.end [1/1] (short) (narrow) %v168_v58, 8  ;;  %206 = vperm.xlu0 %278, %v168_v58  }
 0x24f   :  { %v207_v60 = vpop.permute.xlu0 %206 }
 0x250   :  { %v209_v61 = vmul.f32 %v207_v60, %v203_v59 }
 0x252   :  { %v210_v62 = vsel %vm64_vm0, %v209_v61, 0.0 }
 0x253   :  { %v211_v63 = vrot.slane %v210_v62, 4 }
 0x255   :  { %v212_v0 = vadd.f32 %v211_v63, %v210_v62 }
 0x257   :  { %v213_v1 = vrot.slane %v212_v0, 2 }
 0x259   :  { %v214_v2 = vadd.f32 %v213_v1, %v212_v0 }
 0x25b   :  { %v215_v4 = vrot.slane %v214_v2, 1 }
 0x25d   :  { %v216_v5 = vadd.f32 %v215_v4, %v214_v2 }
 0x25f   :  { %218 = vst.msk [vmem:[#allocation6] sm:$0x1] %vm217_vm11, %v216_v5 }
 0x260   :  { %229 = dma.vmem_to_hbm [thread:$0]  %s225_s9, 16, %s227_s12, [#allocation5]  }
 0x281   :  { %v185_v3 = vpop.trf.xlu1 }
 0x282   :  { %202 = vst.msk [vmem:[#allocation7] sm:$0x1] %vm201_vm12, %v185_v3 }
 0x283   :  { %240 = dma.vmem_to_hbm [thread:$0]  %s236_s14, 16, %s238_s17, [#allocation8]  }
 0x284   :  { %365 = dma.done.wait [#allocation5], 16  }
 0x285   :  { %366 = vsyncadd [#allocation5], 4294967280 }
 0x286   :  { %367 = dma.done.wait [#allocation8], 16  }
 0x287   :  { %368 = vsyncadd [#allocation8], 4294967280 }
 0x288   :  { %249 = vsyncpa [#allocation4], 1 }
 0x289   :  { %250 = vsyncpa [#allocation5], 1 }
 0x28a   :  { %251 = vsyncpa [#allocation8], 1 }

</bundles_post_ra>
